<compile_context>
chip_gen: v6e
topology: v6e:2x2x1
jax: 0.10.0
libtpu: 0.0.40
codegen_flags: <defaults>
</compile_context>

<pallas_src>
import numpy as np
import jax
import jax.numpy as jnp
from jax.experimental import pallas as pl
from jax.experimental.pallas import tpu as pltpu


# ----------------------------------------------------------------------------
# Static operator construction (numpy, done once per spatial shape).
# ----------------------------------------------------------------------------
def _adaptive_pool_matrix(in_size: int, out_size: int, dtype=np.float32):
    """P[i, s]: pooled[i] = sum_s P[i, s] * x[s]; matches AdaptiveAvgPool2d
    along one axis (start=floor(i*L/B), end=ceil((i+1)*L/B))."""
    P = np.zeros((out_size, in_size), dtype=dtype)
    for i in range(out_size):
        start = (i * in_size) // out_size
        end = -(-((i + 1) * in_size) // out_size)  # ceil division
        P[i, start:end] = 1.0 / (end - start)
    return P


def _bilinear_upsample_matrix(out_size: int, in_size: int, dtype=np.float32):
    """U[o, i]: up[o] = sum_i U[o, i] * x[i]; matches
    F.interpolate(mode='bilinear', align_corners=True) along one axis."""
    U = np.zeros((out_size, in_size), dtype=dtype)
    if in_size == 1:
        U[:, 0] = 1.0
        return U
    for o in range(out_size):
        src = 0.0 if out_size == 1 else o * (in_size - 1) / (out_size - 1)
        i0 = min(int(np.floor(src)), in_size - 1)
        i1 = min(i0 + 1, in_size - 1)
        w1 = src - i0
        U[o, i0] += 1.0 - w1
        U[o, i1] += w1
    return U


def _fused_operators(bins, H, W, C_out, dtype=np.float32):
    """Fused pool / upsample / mask operators over all bins.

    Returns:
      pmat_all: (H*W, B2)  with B2 = sum(bin^2); pooled = x @ pmat_all
      umat_all: (B2, H*W)  stacked per-bin bilinear (align_corners) operators
      mask:     (len(bins)*C_out, B2) block mask selecting, for each bin's
                channel block, only that bin's pooled columns.
    """
    pmats, umats = [], []
    for b in bins:
        ph = _adaptive_pool_matrix(H, b, dtype)          # (b, H)
        pw = _adaptive_pool_matrix(W, b, dtype)          # (b, W)
        uh = _bilinear_upsample_matrix(H, b, dtype)      # (H, b)
        uw = _bilinear_upsample_matrix(W, b, dtype)      # (W, b)
        pmats.append(np.kron(ph, pw).T)                  # (HW, b*b), s = h*W+w
        umats.append(np.kron(uh, uw).T)                  # (b*b, HW)
    pmat_all = np.concatenate(pmats, axis=1)             # (HW, B2)
    umat_all = np.concatenate(umats, axis=0)             # (B2, HW)
    B2 = pmat_all.shape[1]
    mask = np.zeros((len(bins) * C_out, B2), dtype=dtype)
    off = 0
    for i, b in enumerate(bins):
        mask[i * C_out:(i + 1) * C_out, off:off + b * b] = 1.0
        off += b * b
    return pmat_all, umat_all, mask


# ----------------------------------------------------------------------------
# Tiling / VMEM-limit helpers.
# ----------------------------------------------------------------------------
def _pick_c_tile(C_in, HW, itemsize, budget_bytes=8 << 20):
    """Largest C_in tile that (a) divides C_in, (b) keeps the (TC, HW) x block
    under budget, (c) is a multiple of 256 (or 128) so the (C_br, TC) weight
    block's lane dim stays MXU-aligned.  Falls back to the full C_in."""
    if C_in * HW * itemsize <= budget_bytes:
        return C_in
    for align in (256, 128):
        best = None
        t = align
        while t <= C_in:
            if C_in % t == 0 and t * HW * itemsize <= budget_bytes:
                best = t
            t += align
        if best is not None:
            return best
    return C_in


def _pick_hw_tile(HW, C_total, itemsize, budget_bytes=8 << 20):
    """Largest HW tile that divides HW, is a multiple of 128 (lane-dense
    output stores) and keeps the (C_total, THW) output block under budget."""
    if C_total * HW * itemsize <= budget_bytes:
        return HW
    best = None
    t = 128
    while t <= HW:
        if HW % t == 0 and C_total * t * itemsize <= budget_bytes:
            best = t
        t += 128
    return best if best is not None else HW


def _vmem_limit_bytes(per_step_bytes):
    """Scoped VMEM limit derived from the actual per-step block+scratch bytes,
    clamped to ~85% of the chip's physical VMEM (64 MiB on v7x, 128 on v5e/v6e)."""
    try:
        info = pltpu.get_tpu_info()
        cap = int(getattr(info, "vmem_capacity_bytes", 128 << 20))
    except Exception:
        cap = 64 << 20
    want = int(per_step_bytes) + (4 << 20)          # + headroom for DMA/internal
    return int(max(16 << 20, min(want, int(cap * 0.85))))


# ----------------------------------------------------------------------------
# Kernel 1 (reduce): x -> y_act = relu(W_stacked @ (x @ pmat) + bias) * mask,
# accumulated over C_in tiles.
# ----------------------------------------------------------------------------
def _ppm_reduce_kernel(x_ref, w_ref, bias_ref, pmat_ref, mask_ref,
                       y_ref, acc_ref):
    # x_ref:    (1, TC, HW)   one C_in tile of the flattened NCHW input
    # w_ref:    (C_br, TC)    stacked 1x1 conv weights * folded BN scale (tile)
    # bias_ref: (C_br, 1)     folded BN bias
    # pmat_ref: (HW, B2)      concatenated adaptive-avg-pool operators
    # mask_ref: (C_br, B2)    block mask (bin channels <-> bin columns)
    # y_ref:    (1, C_br, B2) activated, masked pooled-conv output
    # acc_ref:  (C_br, B2)    f32 accumulator scratch (lives across the k axis)
    k = pl.program_id(1)

    @pl.when(k == 0)
    def _():
        acc_ref[...] = jnp.zeros_like(acc_ref)

    pooled = jnp.dot(x_ref[0], pmat_ref[...],
                     preferred_element_type=jnp.float32)          # (TC, B2)
    acc_ref[...] += jnp.dot(w_ref[...], pooled,
                            preferred_element_type=jnp.float32)   # (C_br, B2)

    @pl.when(k == pl.num_programs(1) - 1)
    def _():
        # Folded BN bias + ReLU, then zero cross-bin columns (mask AFTER the
        # nonlinearity, which is exact because each bin's rows x columns block
        # of acc equals that bin's un-fused pre-activation).
        y = jnp.maximum(acc_ref[...] + bias_ref[...], 0.0) * mask_ref[...]
        y_ref[0] = y.astype(y_ref.dtype)


def ppm_reduce(x_flat, w_stacked, bias_stacked, pmat_all, mask):
    """x_flat: (N, C_in, HW) -> y_act: (N, C_br, B2) float32."""
    N, C_in, HW = x_flat.shape
    C_br = w_stacked.shape[0]
    B2 = pmat_all.shape[1]
    in_itemsize = x_flat.dtype.itemsize

    TC = _pick_c_tile(C_in, HW, in_itemsize)
    K = C_in // TC

    per_step = (2 * TC * HW * in_itemsize          # x tile, double-buffered
                + 2 * C_br * TC * 4                # w tile, double-buffered
                + HW * B2 * 4                      # pmat, single-buffered
                + C_br * 128 * 4                   # bias (lane-padded), single
                + C_br * B2 * 4                    # mask, single-buffered
                + 2 * C_br * B2 * 4                # y output block
                + C_br * B2 * 4)                   # accumulator scratch

    flops = int(2 * N * B2 * (C_in * HW + C_br * C_in))
    bytes_accessed = int(N * C_in * HW * in_itemsize
                         + 4 * (HW * B2 + C_br * (C_in + 1 + B2))
                         + N * C_br * B2 * 4)

    return pl.pallas_call(
        _ppm_reduce_kernel,
        out_shape=jax.ShapeDtypeStruct((N, C_br, B2), jnp.float32),
        grid_spec=pltpu.PrefetchScalarGridSpec(
            num_scalar_prefetch=0,
            grid=(N, K),                                   # reduction axis last
            in_specs=[
                pl.BlockSpec((1, TC, HW), lambda n, k: (n, k, 0)),
                pl.BlockSpec((C_br, TC), lambda n, k: (0, k)),
                # Grid-invariant operands: single VMEM buffer (no double-buffer).
                pl.BlockSpec((C_br, 1), lambda n, k: (0, 0),
                             pipeline_mode=pl.Buffered(1)),
                pl.BlockSpec((HW, B2), lambda n, k: (0, 0),
                             pipeline_mode=pl.Buffered(1)),
                pl.BlockSpec((C_br, B2), lambda n, k: (0, 0),
                             pipeline_mode=pl.Buffered(1)),
            ],
            out_specs=pl.BlockSpec((1, C_br, B2), lambda n, k: (n, 0, 0)),
            scratch_shapes=[pltpu.VMEM((C_br, B2), jnp.float32)],
        ),
        compiler_params=pltpu.CompilerParams(
            dimension_semantics=("parallel", "arbitrary"),
            vmem_limit_bytes=_vmem_limit_bytes(per_step)),
        cost_estimate=pl.CostEstimate(flops=flops, transcendentals=0,
                                      bytes_accessed=bytes_accessed),
    )(x_flat, w_stacked, bias_stacked, pmat_all, mask)


# ----------------------------------------------------------------------------
# Kernel 2 (expand / writeback): per HW tile, up = y_act @ umat[:, tile] and
# write the concatenated [x ; branches] output tile.
# ----------------------------------------------------------------------------
def _ppm_expand_kernel(y_ref, x_ref, umat_ref, o_ref):
    # y_ref:    (1, C_br, B2)
    # x_ref:    (1, C_in, THW)           passthrough tile (copy only)
    # umat_ref: (B2, THW)                stacked bilinear upsample operators
    # o_ref:    (1, C_in + C_br, THW)    concatenated output tile
    c_in = x_ref.shape[1]
    up = jnp.dot(y_ref[0], umat_ref[...],
                 preferred_element_type=jnp.float32)          # (C_br, THW)
    # Identity passthrough lives only in this lightweight writeback call, not
    # in the matmul/accumulation kernel's VMEM working set.
    o_ref[0, 0:c_in, :] = x_ref[0].astype(o_ref.dtype)
    # NOTE: when C_in % 8 != 0 (as in the toy self-test) this store starts at
    # an unaligned sublane offset -> masked stores; correct, just slower.
    o_ref[0, c_in:, :] = up.astype(o_ref.dtype)


def ppm_expand(y_act, x_flat, umat_all, out_dtype=None):
    """y_act: (N, C_br, B2), x_flat: (N, C_in, HW) -> (N, C_in + C_br, HW)."""
    N, C_in, HW = x_flat.shape
    C_br, B2 = y_act.shape[1], y_act.shape[2]
    C_total = C_in + C_br
    out_dtype = x_flat.dtype if out_dtype is None else jnp.dtype(out_dtype)
    out_itemsize = jnp.dtype(out_dtype).itemsize
    in_itemsize = x_flat.dtype.itemsize

    THW = _pick_hw_tile(HW, C_total, max(out_itemsize, in_itemsize))
    J = HW // THW

    per_step = (2 * C_br * B2 * 4
                + 2 * C_in * THW * in_itemsize
                + 2 * B2 * THW * 4
                + 2 * C_total * THW * out_itemsize)

    flops = int(2 * N * C_br * B2 * HW)
    bytes_accessed = int(N * C_br * B2 * 4 + N * C_in * HW * in_itemsize
                         + B2 * HW * 4 + N * C_total * HW * out_itemsize)

    return pl.pallas_call(
        _ppm_expand_kernel,
        out_shape=jax.ShapeDtypeStruct((N, C_total, HW), out_dtype),
        grid_spec=pltpu.PrefetchScalarGridSpec(
            num_scalar_prefetch=0,
            grid=(N, J),
            in_specs=[
                pl.BlockSpec((1, C_br, B2), lambda n, j: (n, 0, 0)),
                pl.BlockSpec((1, C_in, THW), lambda n, j: (n, 0, j)),
                pl.BlockSpec((B2, THW), lambda n, j: (0, j)),
            ],
            out_specs=pl.BlockSpec((1, C_total, THW), lambda n, j: (n, 0, j)),
        ),
        compiler_params=pltpu.CompilerParams(
            # Both axes independent -> both v7x TensorCores busy even at N==1.
            dimension_semantics=("parallel", "parallel"),
            vmem_limit_bytes=_vmem_limit_bytes(per_step)),
        cost_estimate=pl.CostEstimate(flops=flops, transcendentals=0,
                                      bytes_accessed=bytes_accessed),
    )(y_act, x_flat, umat_all)


# ----------------------------------------------------------------------------
# PPM module (parameter setup + glue; hot path runs in the Pallas kernels).
# ----------------------------------------------------------------------------
class PPMPallas:
    def __init__(self, in_channels, out_channels, bins, from_layer, to_layer,
                 key, out_dtype=None):
        self.in_channels = in_channels
        self.out_channels = out_channels
        self.bins = tuple(bins)
        self.from_layer = from_layer
        self.to_layer = to_layer
        self.out_dtype = out_dtype          # None -> same as input (f32 test)
        eps = 1e-5

        self.branch_params = []          # unfused (w, scale, bias) for ref
        w_folded, b_folded = [], []
        for b_idx, _ in enumerate(self.bins):
            k_w, k_g, k_b, k_m, k_v = jax.random.split(
                jax.random.fold_in(key, b_idx), 5)
            # Conv2d(in, out, 1, bias=False) weight, kaiming-ish scale.
            w = jax.random.normal(k_w, (out_channels, in_channels),
                                  jnp.float32) * (2.0 / in_channels) ** 0.5
            # BatchNorm2d (eval semantics), folded into scale / bias.
            gamma = 1.0 + 0.1 * jax.random.normal(k_g, (out_channels,),
                                                  jnp.float32)
            beta = 0.1 * jax.random.normal(k_b, (out_channels,), jnp.float32)
            running_mean = 0.1 * jax.random.normal(k_m, (out_channels,),
                                                   jnp.float32)
            running_var = 1.0 + 0.1 * jnp.abs(
                jax.random.normal(k_v, (out_channels,), jnp.float32))
            scale = gamma / jnp.sqrt(running_var + eps)
            bias = beta - running_mean * scale
            self.branch_params.append((np.asarray(w), np.asarray(scale),
                                       np.asarray(bias)))
            # Fold BN scale into the conv weight (exact, done once at setup).
            w_folded.append(scale[:, None] * w)
            b_folded.append(bias[:, None])

        self.w_stacked = jnp.concatenate(w_folded, axis=0)     # (nb*C_out, C_in)
        self.bias_stacked = jnp.concatenate(b_folded, axis=0)  # (nb*C_out, 1)
        self._op_cache = {}

    def _operators(self, H, W):
        key = (H, W)
        if key not in self._op_cache:
            pmat, umat, mask = _fused_operators(self.bins, H, W,
                                                self.out_channels)
            self._op_cache[key] = (jnp.asarray(pmat), jnp.asarray(umat),
                                   jnp.asarray(mask))
        return self._op_cache[key]

    def forward(self, feats):
        feats_ = dict(feats)
        x = feats_[self.from_layer]                     # (N, C, H, W) NCHW
        N, C, H, W = x.shape
        pmat, umat, mask = self._operators(H, W)
        x_flat = x.reshape(N, C, H * W)
        y_act = ppm_reduce(x_flat, self.w_stacked, self.bias_stacked,
                           pmat, mask)
        out_flat = ppm_expand(y_act, x_flat, umat, out_dtype=self.out_dtype)
        feats_[self.to_layer] = out_flat.reshape(N, -1, H, W)
        return feats_


# ----------------------------------------------------------------------------
# Float64 numpy reference (per-bin, un-fused) for the correctness check.
# ----------------------------------------------------------------------------
def ppm_reference_np(ppm: PPMPallas, x):
    x_np = np.asarray(x, dtype=np.float64)
    N, C, H, W = x_np.shape
    x_flat = x_np.reshape(N, C, H * W)
    outs = [x_np]
    for (w, scale, bias), bin_ in zip(ppm.branch_params, ppm.bins):
        ph = _adaptive_pool_matrix(H, bin_, np.float64)
        pw = _adaptive_pool_matrix(W, bin_, np.float64)
        uh = _bilinear_upsample_matrix(H, bin_, np.float64)
        uw = _bilinear_upsample_matrix(W, bin_, np.float64)
        pmat = np.kron(ph, pw)                      # (b2, HW)
        umat = np.kron(uh, uw)                      # (HW, b2)
        pooled = np.einsum('ncs,bs->ncb', x_flat, pmat)
        y = np.einsum('oc,ncb->nob', np.asarray(w, np.float64), pooled)
        y = (y * np.asarray(scale, np.float64).reshape(1, -1, 1)
             + np.asarray(bias, np.float64).reshape(1, -1, 1))
        y = np.maximum(y, 0.0)
        o = np.einsum('nob,sb->nos', y, umat)
        outs.append(o.reshape(N, -1, H, W))
    return np.concatenate(outs, axis=1)


if __name__ == "__main__":
    key = jax.random.PRNGKey(0)
    k_x, k_p = jax.random.split(key)

    N, C_in, H, W = 2, 4, 16, 16
    C_out = 4
    bins = (1, 2, 3, 6)

    x = jax.random.normal(k_x, (N, C_in, H, W), jnp.float32)

    ppm = PPMPallas(in_channels=C_in, out_channels=C_out, bins=bins,
                    from_layer='c5', to_layer='ppm', key=k_p)

    feats_out = ppm.forward({'c5': x})
    out = jax.block_until_ready(feats_out['ppm'])

    expected_channels = C_in + len(bins) * C_out
    assert out.shape == (N, expected_channels, H, W), out.shape

    ref = ppm_reference_np(ppm, np.asarray(x))
    # Default (non-HIGHEST) MXU matmul precision => relaxed tolerance vs the
    # float64 reference (validated at these toy sizes; tighten with
    # precision=HIGHEST on the conv dot if production accuracy demands it).
    np.testing.assert_allclose(np.asarray(out), ref, rtol=2e-2, atol=2e-2)

    print("KERNEL_OK")
</pallas_src>

<mosaic_0001>
module attributes {stable_mosaic.version = 11 : i64} {
  func.func @_ppm_reduce_kernel(%arg0: i32, %arg1: i32, %arg2: memref<1x4x256xf32, #tpu.memory_space<vmem>>, %arg3: memref<16x4xf32, #tpu.memory_space<vmem>>, %arg4: memref<16x1xf32, #tpu.memory_space<vmem>>, %arg5: memref<256x50xf32, #tpu.memory_space<vmem>>, %arg6: memref<16x50xf32, #tpu.memory_space<vmem>>, %arg7: memref<1x16x50xf32, #tpu.memory_space<vmem>>, %arg8: memref<16x50xf32, #tpu.memory_space<vmem>>) attributes {dimension_semantics = [#tpu.dimension_semantics<parallel>, #tpu.dimension_semantics<arbitrary>], iteration_bounds = array<i64: 2, 1>, scalar_prefetch = 0 : i64, scratch_operands = 1 : i64, tpu.core_type = #tpu.core_type<tc>, window_params = [{transform_indices = @transform_0, window_bounds = array<i64: 1, 4, 256>}, {transform_indices = @transform_1, window_bounds = array<i64: 16, 4>}, {pipeline_mode = #tpu.pipeline_mode<synchronous>, transform_indices = @transform_2, window_bounds = array<i64: 16, 1>}, {pipeline_mode = #tpu.pipeline_mode<synchronous>, transform_indices = @transform_3, window_bounds = array<i64: 256, 50>}, {pipeline_mode = #tpu.pipeline_mode<synchronous>, transform_indices = @transform_4, window_bounds = array<i64: 16, 50>}, {transform_indices = @transform_5, window_bounds = array<i64: 1, 16, 50>}]} {
    %c0_i32 = arith.constant 0 : i32
    %0 = arith.cmpi eq, %arg1, %c0_i32 : i32
    %1 = arith.extui %0 : i1 to i32
    %c0_i32_0 = arith.constant 0 : i32
    %2 = arith.cmpi ne, %1, %c0_i32_0 : i32
    scf.if %2 {
      %cst_14 = arith.constant 0.000000e+00 : f32
      %15 = vector.broadcast %cst_14 : f32 to vector<16x50xf32>
      %c0_15 = arith.constant 0 : index
      %c0_16 = arith.constant 0 : index
      %16 = vector.load %arg8[%c0_15, %c0_16] : memref<16x50xf32, #tpu.memory_space<vmem>>, vector<16x50xf32>
      tpu.vector_store %arg8[%c0_15, %c0_16], %15 {strides = array<i32>} : memref<16x50xf32, #tpu.memory_space<vmem>>, vector<16x50xf32>,
    } else {
    }
    %c0 = arith.constant 0 : index
    %c0_1 = arith.constant 0 : index
    %c0_2 = arith.constant 0 : index
    %3 = vector.load %arg2[%c0, %c0_1, %c0_2] : memref<1x4x256xf32, #tpu.memory_space<vmem>>, vector<1x4x256xf32>
    %4 = vector.shape_cast %3 : vector<1x4x256xf32> to vector<4x256xf32>
    %c0_3 = arith.constant 0 : index
    %c0_4 = arith.constant 0 : index
    %5 = vector.load %arg5[%c0_3, %c0_4] : memref<256x50xf32, #tpu.memory_space<vmem>>, vector<256x50xf32>
    %cst = arith.constant dense<0.000000e+00> : vector<4x50xf32>
    %6 = tpu.matmul %4, %5, %cst {dimension_numbers = #tpu.dot_dimension_numbers<[1], [0], [0], [1], [0, 0, 1, 1], [], []>} : vector<4x256xf32>, vector<256x50xf32>, vector<4x50xf32> -> vector<4x50xf32>
    %c0_5 = arith.constant 0 : index
    %c0_6 = arith.constant 0 : index
    %7 = vector.load %arg8[%c0_5, %c0_6] : memref<16x50xf32, #tpu.memory_space<vmem>>, vector<16x50xf32>
    %c0_7 = arith.constant 0 : index
    %c0_8 = arith.constant 0 : index
    %8 = vector.load %arg3[%c0_7, %c0_8] : memref<16x4xf32, #tpu.memory_space<vmem>>, vector<16x4xf32>
    %cst_9 = arith.constant dense<0.000000e+00> : vector<16x50xf32>
    %9 = tpu.matmul %8, %6, %cst_9 {dimension_numbers = #tpu.dot_dimension_numbers<[1], [0], [0], [1], [0, 0, 1, 1], [], []>} : vector<16x4xf32>, vector<4x50xf32>, vector<16x50xf32> -> vector<16x50xf32>
    %10 = arith.addf %7, %9 : vector<16x50xf32>
    %c0_10 = arith.constant 0 : index
    %c0_11 = arith.constant 0 : index
    %11 = vector.load %arg8[%c0_10, %c0_11] : memref<16x50xf32, #tpu.memory_space<vmem>>, vector<16x50xf32>
    tpu.vector_store %arg8[%c0_10, %c0_11], %10 {strides = array<i32>} : memref<16x50xf32, #tpu.memory_space<vmem>>, vector<16x50xf32>,
    %c0_i32_12 = arith.constant 0 : i32
    %12 = arith.cmpi eq, %arg1, %c0_i32_12 : i32
    %13 = arith.extui %12 : i1 to i32
    %c0_i32_13 = arith.constant 0 : i32
    %14 = arith.cmpi ne, %13, %c0_i32_13 : i32
    scf.if %14 {
      %c0_14 = arith.constant 0 : index
      %c0_15 = arith.constant 0 : index
      %15 = vector.load %arg8[%c0_14, %c0_15] : memref<16x50xf32, #tpu.memory_space<vmem>>, vector<16x50xf32>
      %c0_16 = arith.constant 0 : index
      %c0_17 = arith.constant 0 : index
      %16 = vector.load %arg4[%c0_16, %c0_17] : memref<16x1xf32, #tpu.memory_space<vmem>>, vector<16x1xf32>
      %17 = vector.broadcast %16 : vector<16x1xf32> to vector<16x50xf32>
      %18 = arith.addf %15, %17 : vector<16x50xf32>
      %cst_18 = arith.constant 0.000000e+00 : f32
      %19 = vector.broadcast %cst_18 : f32 to vector<16x50xf32>
      %20 = arith.maximumf %18, %19 : vector<16x50xf32>
      %c0_19 = arith.constant 0 : index
      %c0_20 = arith.constant 0 : index
      %21 = vector.load %arg6[%c0_19, %c0_20] : memref<16x50xf32, #tpu.memory_space<vmem>>, vector<16x50xf32>
      %22 = arith.mulf %20, %21 : vector<16x50xf32>
      %c0_21 = arith.constant 0 : index
      %c0_22 = arith.constant 0 : index
      %c0_23 = arith.constant 0 : index
      %23 = vector.load %arg7[%c0_21, %c0_22, %c0_23] : memref<1x16x50xf32, #tpu.memory_space<vmem>>, vector<1x16x50xf32>
      %24 = vector.shape_cast %23 : vector<1x16x50xf32> to vector<16x50xf32>
      %25 = vector.shape_cast %22 : vector<16x50xf32> to vector<1x16x50xf32>
      tpu.vector_store %arg7[%c0_21, %c0_22, %c0_23], %25 {strides = array<i32>} : memref<1x16x50xf32, #tpu.memory_space<vmem>>, vector<1x16x50xf32>,
    } else {
    }
    return
  }
  func.func @transform_0(%arg0: i32, %arg1: i32) -> (i32, i32, i32) {
    %c0_i32 = arith.constant 0 : i32
    %c0_i32_0 = arith.constant 0 : i32
    return %arg0, %arg1, %c0_i32 : i32, i32, i32
  }
  func.func @transform_1(%arg0: i32, %arg1: i32) -> (i32, i32) {
    %c0_i32 = arith.constant 0 : i32
    %c0_i32_0 = arith.constant 0 : i32
    return %c0_i32, %arg1 : i32, i32
  }
  func.func @transform_2(%arg0: i32, %arg1: i32) -> (i32, i32) {
    %c0_i32 = arith.constant 0 : i32
    %c0_i32_0 = arith.constant 0 : i32
    %c0_i32_1 = arith.constant 0 : i32
    return %c0_i32, %c0_i32_0 : i32, i32
  }
  func.func @transform_3(%arg0: i32, %arg1: i32) -> (i32, i32) {
    %c0_i32 = arith.constant 0 : i32
    %c0_i32_0 = arith.constant 0 : i32
    %c0_i32_1 = arith.constant 0 : i32
    return %c0_i32, %c0_i32_0 : i32, i32
  }
  func.func @transform_4(%arg0: i32, %arg1: i32) -> (i32, i32) {
    %c0_i32 = arith.constant 0 : i32
    %c0_i32_0 = arith.constant 0 : i32
    %c0_i32_1 = arith.constant 0 : i32
    return %c0_i32, %c0_i32_0 : i32, i32
  }
  func.func @transform_5(%arg0: i32, %arg1: i32) -> (i32, i32, i32) {
    %c0_i32 = arith.constant 0 : i32
    %c0_i32_0 = arith.constant 0 : i32
    %c0_i32_1 = arith.constant 0 : i32
    return %arg0, %c0_i32, %c0_i32_0 : i32, i32, i32
  }
}

</mosaic_0001>

<bundles_post_ra>
// kernel: tpu_custom_call.1
= control target key start
LH: loop header
LB: loop body
LE: loop exit
PB: predicated region body
PF: predicated region fallthrough
CT: control target
= control target key end

     0   :  { %10 = vsyncpa [#allocation4], 0  ;;  %s1081_s0 = inlined_call_operand.vmem [shape: f32[2,4,256], index: 0, kind: input, shape index: {}]   ;;  %s1082_s1 = inlined_call_operand.vmem [shape: f32[16,4], index: 1, kind: input, shape index: {}]   ;;  %s1083_s2 = inlined_call_operand.vmem [shape: f32[16,1], index: 2, kind: input, shape index: {}]   ;;  %s1084_s3 = inlined_call_operand.vmem [shape: f32[256,50], index: 3, kind: input, shape index: {}]   ;;  %s1085_s4 = inlined_call_operand.vmem [shape: f32[16,50], index: 4, kind: input, shape index: {}]   ;;  %s1086_s5 = inlined_call_operand.hbm [shape: f32[2,16,50], index: 5, kind: output, shape index: {}]  }
   0x1   :  { %12 = vsyncpa [#allocation4 + $0x1], 0  ;;  %s845_s18 = smov 0   ;;  %s847_s19 = smov 0  }
   0x2   :  { %s849_s20 = smov 0   ;;  %s851_s21 = smov 0  }
   0x3   :  { %s853_s22 = smov 0   ;;  %s855_s23 = smov 0  }
   0x4 LB: > { %s609_s24 = sadd.s32 4294967295, %s808_s23   ;;  %s610_s25 = sadd.s32 4294967294, %s808_s23   ;;  %s808_s23 = sphi %s855_s23, %s18_s23   ;;  %s804_s22 = sphi %s853_s22, %s1093_s22   ;;  %s800_s21 = sphi %s851_s21, %s1092_s21   ;;  %s796_s20 = sphi %s849_s20, %s1091_s20   ;;  %s792_s19 = sphi %s847_s19, %s1090_s19   ;;  %s788_s18 = sphi %s845_s18, %s1089_s18  }
   0x5   : > { %s30_s26 = sadd.s32 1, %s804_s22  ;;  %s154_s27 = sadd.s32 1, %s796_s20 }
   0x6   : > { %p32_p0 = scmp.ge.s32.totalorder %s30_s26, 2  ;;  %p164_p1 = scmp.ne.s32.totalorder %s796_s20, %s792_s19 }
   0x7   : > { %p165_p2 = scmp.eq.s32.totalorder %s609_s24, 1  ;;  %p170_p3 = scmp.ne.s32.totalorder %s792_s19, %s788_s18 }
   0x8   : > { %s1095_s26 = smov (%p32_p0, %s30_s26), 0  ;;  %p171_p5 = scmp.eq.s32.totalorder %s610_s25, 1 }
   0x9   : > { %p885_p4 = por %p165_p2, %p164_p1  ;;  %s151_s29 = ssub.s32 %s804_s22, %s1095_s26 }
   0xa   : > { %p614_p6 = scmp.ge.s32.totalorder %s808_s23, 1  ;;  %p152_p7 = scmp.eq.s32.totalorder %s151_s29, 0 }
   0xb   : > { %p892_p8 = por %p171_p5, %p170_p3  ;;  %p217_p9 = scmp.lt.s32.totalorder %s808_s23, 3 }
   0xc   : > { %s898_s6 = scalar_select %p152_p7, %s796_s20, %s154_s27  }
   0xd   : > { %p218_p10 = pnand %p614_p6, %p217_p9 }
   0xe   : > { %p253_p11 = scmp.lt.s32.totalorder (!%p218_p10), %s800_s21, 1  ;;  %s250_s10 = sand.u32 (!%p218_p10), 1, %s792_s19  }
   0xf   : > { %221 = sbr.rel (%p218_p10) target bundleno = 477 (0x1dd), region = 40  ;;  %s627_s13 = sshll.u32 (!%p218_p10), %s800_s21, 8 }
  0x10   : > { %s1030_s27 = scalar_lea.hbm (!%p218_p10), %s1086_s5, %s627_s13  ;;  %s812_s8 = smov (!%p218_p10), [#allocation3]  }
  0x11   : > { %s736_s9 = sshll.u32 (!%p218_p10), %s812_s8, 4  ;;  %s737_s9 = int_to_ptr.vmem [resolvable:$false] %s736_s9 }
  0x14   : > { %v305_v0 = vld [vmem:[%s1084_s3 + $0xf8] sm:$0xff]  ;;  %v304_v2 = vld [vmem:[%s1084_s3 + $0xf0] sm:$0xff]  ;;  %v303_v4 = vld [vmem:[%s1084_s3 + $0xe8] sm:$0xff]  ;;  %s254_s17 = scalar_select %p253_p11, %s800_s21, 1  ;;  %vm383_vm0 = vcmask 31744   ;;  %vm270_vm1 = vcmask 408576  }
  0x15   : > { %v289_v1 = vld [vmem:[%s1084_s3 + $0x78] sm:$0xff]  ;;  %628 = vmatprep.subr.mxu0 %v305_v0  ;;  %v288_v3 = vld [vmem:[%s1084_s3 + $0x70] sm:$0xff]  ;;  %v287_v5 = vld [vmem:[%s1084_s3 + $0x68] sm:$0xff]  ;;  %v810_v36 = vmov 0   ;;  %v811_v37 = vmov 0.0   ;;  %vm390_vm2 = vcmask 1043456  }
  0x16   : > { %629 = vmatpush3.msra.mxu0 %v289_v1  ;;  %v302_v6 = vld [vmem:[%s1084_s3 + $0xe0] sm:$0xff]  ;;  %s626_s7 = sshll.u32 %s254_s17, 3  ;;  %v301_v8 = vld [vmem:[%s1084_s3 + $0xd8] sm:$0xff]  ;;  %v300_v10 = vld [vmem:[%s1084_s3 + $0xd0] sm:$0xff]  ;;  %730 = vset.pattern.permute.xlu0 %v810_v36  ;;  %272 = vst.msk [vmem:[#allocation2 + $0x8] sm:$0xff] %vm270_vm1, %v811_v37  ;;  %s1036_s21 = scalar_lea.sflag [#allocation4], %s250_s10 }
  0x17   : > { %630 = vmatprep.subr.mxu0 %v304_v2  ;;  %v286_v7 = vld [vmem:[%s1084_s3 + $0x60] sm:$0xff]  ;;  %v285_v9 = vld [vmem:[%s1084_s3 + $0x58] sm:$0xff]  ;;  %s261_s16 = scalar_lea.vmem %s1081_s0, %s626_s7  ;;  %v284_v11 = vld [vmem:[%s1084_s3 + $0x50] sm:$0xff]  ;;  %271 = vst.msk [vmem:[#allocation2] sm:$0xff] %vm270_vm1, %v811_v37  ;;  %s615_s7 = sshll.u32 %s250_s10, 4 }
  0x18   : > { %631 = vmatpush3.msra.mxu0 %v288_v3  ;;  %v299_v12 = vld [vmem:[%s1084_s3 + $0xc8] sm:$0xff]  ;;  %v273_v13 = vld [vmem:[%s261_s16] sm:$0xff]  ;;  %v297_v18 = vld [vmem:[%s1084_s3 + $0xb8] sm:$0xff]  ;;  %s252_s14 = scalar_lea.vmem [#allocation3], %s615_s7  ;;  %s738_s7 = scalar_lea.vmem %s737_s9, 512 }
  0x19   : > { %632 = vmatprep.subr.mxu0 %v303_v4  ;;  %v283_v14 = vld [vmem:[%s1084_s3 + $0x48] sm:$0xff]  ;;  %v307_v15 = vcombine.high %v273_v13, %v273_v13  ;;  %v298_v16 = vld [vmem:[%s1084_s3 + $0xc0] sm:$0xff]  ;;  %v281_v19 = vld [vmem:[%s1084_s3 + $0x38] sm:$0xff]  ;;  %s515_s15 = sshll.u32 %s252_s14, 4  ;;  %s1032_s15 = int_to_ptr.vmem [resolvable:$true] %s515_s15 }
  0x1a   : > { %633 = vmatpush3.msra.mxu0 %v287_v5  ;;  %v282_v17 = vld [vmem:[%s1084_s3 + $0x40] sm:$0xff]  ;;  %v296_v20 = vld [vmem:[%s1084_s3 + $0xb0] sm:$0xff]  ;;  %v295_v22 = vld [vmem:[%s1084_s3 + $0xa8] sm:$0xff]  ;;  %s732_s29 = scalar_lea.vmem %s1032_s15, 256  ;;  %p739_p1 = scmp.lt.s32.totalorder %s1032_s15, %s737_s9 }
  0x1b   : > { %634 = vmatprep.subr.mxu0 %v302_v6  ;;  %373 = vmatprep.mubr.f32.mxu0 %v307_v15  ;;  %v280_v21 = vld [vmem:[%s1084_s3 + $0x30] sm:$0xff]  ;;  %v279_v23 = vld [vmem:[%s1084_s3 + $0x28] sm:$0xff]  ;;  %v294_v24 = vld [vmem:[%s1084_s3 + $0xa0] sm:$0xff]  ;;  %p733_p12 = scmp.ne.s32.totalorder %s1032_s15, %s732_s29  ;;  %p740_p2 = scmp.lt.s32.totalorder %s738_s7, %s732_s29 }
  0x1c   : > { %635 = vmatpush3.msra.mxu0 %v286_v7  ;;  %v278_v25 = vld [vmem:[%s1084_s3 + $0x20] sm:$0xff]  ;;  %v293_v26 = vld [vmem:[%s1084_s3 + $0x98] sm:$0xff]  ;;  %v292_v28 = vld [vmem:[%s1084_s3 + $0x90] sm:$0xff] }
  0x1d   : > { %636 = vmatprep.subr.mxu0 %v301_v8  ;;  %v277_v27 = vld [vmem:[%s1084_s3 + $0x18] sm:$0xff]  ;;  %v276_v29 = vld [vmem:[%s1084_s3 + $0x10] sm:$0xff]  ;;  %v291_v30 = vld [vmem:[%s1084_s3 + $0x88] sm:$0xff]  ;;  %p734_p13 = pnand %p733_p12, %p885_p4  ;;  %p741_p3 = por %p740_p2, %p739_p1 }
  0x1e   : > { %637 = vmatpush3.msra.mxu0 %v285_v9  ;;  %v275_v31 = vld [vmem:[%s1084_s3 + $0x8] sm:$0xff]  ;;  %v290_v32 = vld [vmem:[%s1084_s3 + $0x80] sm:$0xff] }
  0x1f   : > { %638 = vmatprep.subr.mxu0 %v300_v10  ;;  %v274_v33 = vld [vmem:[%s1084_s3] sm:$0xff]  ;;  %v480_v38 = vld [vmem:[%s1083_s2 + $0x8] sm:$0xff]  ;;  %p735_p0 = pneg %p734_p13 }
  0x20   : > { %639 = vmatpush3.msra.mxu0 %v284_v11  ;;  %v381_v34 = vld [vmem:[%s1082_s1] sm:$0xff]  ;;  %v382_v42 = vld [vmem:[%s1082_s1 + $0x8] sm:$0xff] }
  0x21   : > { %640 = vmatprep.subr.mxu0 %v299_v12  ;;  %668 = vmatprep.mubr.msk.f32.mxu1 %vm383_vm0, %v381_v34  ;;  %v479_v35 = vld [vmem:[%s1083_s2] sm:$0xff]  ;;  %v380_v43 = vld [vmem:[#allocation2 + $0x8] sm:$0xff]  ;;  %p742_p5 = pnand %p741_p3, %p735_p0 }
  0x22   : > { %641 = vmatpush3.msra.mxu0 %v283_v14  ;;  %483 = vperm.xlu0 %730, %v479_v35   ;;  %v379_v45 = vld [vmem:[#allocation2] sm:$0xff]  ;;  %v496_v54 = vld [vmem:[%s1085_s4 + $0x8] sm:$0xff] }
  0x23   : > { %642 = vmatprep.subr.mxu0 %v298_v16  ;;  %v495_v57 = vld [vmem:[%s1085_s4] sm:$0xff] }
  0x24   : > { %643 = vmatpush3.msra.mxu0 %v282_v17 }
  0x25   : > { %644 = vmatprep.subr.mxu0 %v297_v18 }
  0x26   : > { %645 = vmatpush3.msra.mxu0 %v281_v19  ;;  %488 = vperm.xlu0 %730, %v480_v38  }
  0x27   : > { %646 = vmatprep.subr.mxu0 %v296_v20 }
  0x28   : > { %647 = vmatpush3.msra.mxu0 %v280_v21 }
  0x29   : > { %648 = vmatprep.subr.mxu0 %v295_v22 }
  0x2a   : > { %649 = vmatpush3.msra.mxu0 %v279_v23 }
  0x2b   : > { %650 = vmatprep.subr.mxu0 %v294_v24 }
  0x2c   : > { %651 = vmatpush3.msra.mxu0 %v278_v25 }
  0x2d   : > { %652 = vmatprep.subr.mxu0 %v293_v26 }
  0x2e   : > { %653 = vmatpush3.msra.mxu0 %v277_v27 }
  0x2f   : > { %654 = vmatprep.subr.mxu0 %v292_v28 }
  0x30   : > { %655 = vmatpush3.msra.mxu0 %v276_v29 }
  0x31   : > { %656 = vmatprep.subr.mxu0 %v291_v30 }
  0x32   : > { %657 = vmatpush3.msra.mxu0 %v275_v31 }
  0x33   : > { %658 = vmatprep.subr.mxu0 %v290_v32 }
  0x34   : > { %659 = vmatpush3.msra.mxu0 %v274_v33 }
  0x35   : > { %374 = vmatmul.mubr.f32.vlgmr.msra.gmra.mxu0 %v273_v13 }
  0x9d   : > { %v484_v49 = vpop.permute.xlu0 %483 }
  0xa1   : > { %v489_v50 = vpop.permute.xlu0 %488 }
  0xf5   : > { %v660_v39 = vpop.f32.mrf.mxu0 }
  0xf7   : > { %v661_v40 = vpop.f32.mrf.mxu0 }
  0xf8   : > { %v662_v41 = vadd.f32 %v661_v40, %v660_v39 }
  0xfa   : > { %666 = vmatprep.subr.msk.mxu1 %vm390_vm2, %v662_v41 }
  0xfb   : > { %667 = vmatpush3.msk.msra.mxu1 %vm390_vm2, %v662_v41 }
  0xfc   : > { %669 = vmatmul.mubr.msk.f32.vlgmr.msra.gmra.mxu1 %vm383_vm0, %v382_v42 }
 0x1bc   : > { %v670_v44 = vpop.f32.mrf.mxu1 }
 0x1bd   : > { %v470_v46 = vadd.f32 %v670_v44, %v380_v43 }
 0x1be   : > { %v460_v47 = vpop.f32.mrf.mxu1 }
 0x1bf   : > { %473 = vst.msk [vmem:[#allocation2 + $0x8] sm:$0xff] %vm270_vm1, %v470_v46  ;;  %v469_v48 = vadd.f32 %v460_v47, %v379_v45 }
 0x1c1   : > { %472 = vst.msk [vmem:[#allocation2] sm:$0xff] %vm270_vm1, %v469_v48 }
 0x1c6   : > { %v478_v51 = vld [vmem:[#allocation2 + $0x8] sm:$0xff] }
 0x1c7   : > { %v492_v52 = vadd.f32 %v489_v50, %v478_v51 }
 0x1c8   : > { %v477_v53 = vld [vmem:[#allocation2] sm:$0xff] }
 0x1c9   : > { %v491_v55 = vadd.f32 %v484_v49, %v477_v53  ;;  %v494_v56 = vmax.f32 %v492_v52, 0.0 }
 0x1cb   : > { %v493_v58 = vmax.f32 %v491_v55, 0.0  ;;  %v498_v59 = vmul.f32 %v496_v54, %v494_v56 }
 0x1cd   : > { %v497_v60 = vmul.f32 %v495_v57, %v493_v58  ;;  %500 = vst.msk [vmem:[%s252_s14 + $0x8] sm:$0xff] %vm270_vm1, %v498_v59 }
 0x1cf   : > { %499 = vst.msk [vmem:[%s252_s14] sm:$0xff] %vm270_vm1, %v497_v60 }
 0x1d0   : > { %745 = shalt.err (!%p742_p5)
}
 0x1d1   : > { %s746_s10 = scalar_lea.hbm %s1030_s27, 256  ;;  %s750_s13 = scalar_lea.hbm %s1086_s5, 512 }
 0x1d2   : > { %p747_p6 = scmp.ne.s32.totalorder %s1030_s27, %s746_s10  ;;  %p751_p10 = scmp.lt.s32.totalorder %s1030_s27, %s1086_s5 }
 0x1d3   : > { %p752_p11 = scmp.lt.s32.totalorder %s750_s13, %s746_s10 }
 0x1d4   : > { %p748_p7 = pnand %p747_p6, %p885_p4 }
 0x1d5   : > { %p753_p12 = por %p752_p11, %p751_p10 }
 0x1d6   : > { %p749_p9 = pneg %p748_p7 }
 0x1d8   : > { %p754_p13 = pnand %p753_p12, %p749_p9 }
 0x1da   : > { %757 = shalt.err (!%p754_p13)
}
 0x1db   : > { %s813_s17 = smov 128   ;;  %s814_s24 = smov 8  }
 0x1dc   : > { %671 = dma.vmem_to_hbm [thread:$0]  (%p885_p4), %s1032_s15, 256, %s1030_s27, %s1036_s21, %s813_s17, %s813_s17, %s814_s24  }
 0x1dd PF: > { %p677_p0 = scmp.ge.s32.totalorder %s808_s23, 2  ;;  %s530_s25 = sand.u32 1, %s788_s18  }
 0x1de   : > { %s531_s29 = scalar_lea.sflag [#allocation4], %s530_s25 }
 0x1df   : > { %p674_p1 = pnand %p677_p0, %p892_p8 }
 0x1e1   : > { %p675_p2 = pneg %p674_p1 }
 0x1e3   : > { %783 = dma.done.wait (%p675_p2), %s531_s29, 256  }
 0x1e4   : > { %785 = vsyncadd (%p675_p2), %s531_s29, 4294967040  ;;  %s18_s23 = sadd.s32 1, %s808_s23   ;;  %s1089_s18 = smov %s792_s19 }
 0x1e5   : > { %p15_p3 = scmp.ge.s32.totalorder %s18_s23, 4   ;;  %s1090_s19 = smov %s796_s20 }
 0x1e6   : > { %s1091_s20 = smov %s898_s6  ;;  %s1092_s21 = smov %s804_s22 }
 0x1e7   : > { %s1093_s22 = smov %s1095_s26  ;;  %17 = sbr.rel (!%p15_p3) target bundleno = 4 (0x4), region = 86 }
 0x1ec   :  { %536 = vsyncpa [#allocation4], 1 }
 0x1ed   :  { %538 = vsyncpa [#allocation4 + $0x1], 1 }

</bundles_post_ra>
